<compile_context>
chip_gen: v7x
topology: tpu7x:2x2x1
jax: 0.10.0
libtpu: 0.0.40
codegen_flags: <defaults>
</compile_context>

<pallas_src>
import jax
import jax.numpy as jnp
from jax.experimental import pallas as pl
from jax.experimental.pallas import tpu as pltpu


def _round_up(n, m):
    return ((n + m - 1) // m) * m


# Leave headroom inside v7x's 64 MiB of VMEM per TensorCore.
_VMEM_BUDGET_BYTES = 48 * 1024 * 1024


def _vmem_working_set(tile_b, in_f, hid_f, out_f, x_itemsize, out_itemsize):
    """Approximate per-grid-step VMEM bytes (Mosaic-padded layouts)."""
    def f32(r, c):
        return _round_up(r, 8) * _round_up(c, 128) * 4

    def bf16(r, c):
        return _round_up(r, 16) * _round_up(c, 128) * 2

    x_buf = 2 * _round_up(tile_b, 8) * _round_up(in_f, 128) * x_itemsize     # double-buffered x stream
    o_buf = 2 * _round_up(tile_b, 8) * _round_up(out_f, 128) * out_itemsize  # double-buffered out stream
    w_buf = bf16(in_f, hid_f) + bf16(hid_f, hid_f) + bf16(hid_f, out_f)      # single-buffered bf16 weights
    b_buf = 2 * f32(1, hid_f) + f32(1, out_f)                                # f32 biases
    act = 2 * f32(tile_b, hid_f)                                             # live f32 h1 / h2 values
    return x_buf + o_buf + w_buf + b_buf + act


def _choose_tile_b(batch, in_f, hid_f, out_f, x_itemsize, out_itemsize):
    b8 = _round_up(batch, 8)
    if b8 <= 16:
        tile = b8                                   # too small to split across 2 TCs
    else:
        # >= 2 grid steps (v7x megacore) and a large tile (256-512 sweet spot).
        tile = min(512, _round_up(pl.cdiv(b8, 2), 8))
    # Shrink until the working set fits the explicit VMEM budget.
    while tile > 8 and _vmem_working_set(tile, in_f, hid_f, out_f,
                                         x_itemsize, out_itemsize) > _VMEM_BUDGET_BYTES:
        tile = _round_up(tile // 2, 8)
    return tile


def mlp_kernel(x_ref, w1_ref, b1_ref, w2_ref, b2_ref, w3_ref, b3_ref, o_ref):
    # Layer 1: Linear + ReLU (bf16 MXU operands, f32 accumulation + epilogue).
    x = x_ref[...].astype(jnp.bfloat16)             # no-op if x already arrives bf16
    h = jnp.dot(x, w1_ref[...], preferred_element_type=jnp.float32)
    h = jnp.maximum(h + b1_ref[...], 0.0)
    # Layer 2: Linear + ReLU.
    h = jnp.dot(h.astype(jnp.bfloat16), w2_ref[...], preferred_element_type=jnp.float32)
    h = jnp.maximum(h + b2_ref[...], 0.0)
    # Layer 3: Linear (no activation).
    h = jnp.dot(h.astype(jnp.bfloat16), w3_ref[...], preferred_element_type=jnp.float32)
    o_ref[...] = (h + b3_ref[...]).astype(o_ref.dtype)


def prepare_params(w1, b1, w2, b2, w3, b3):
    """One-time param prep (do at init, NOT per forward call).

    Weights are stored (in_features, out_features) and cast to bf16 for the MXU;
    biases stay f32 as (1, out_features) rows for the f32 epilogue.  No padding:
    the small dims travel as full-array blocks and Mosaic pads VMEM layouts.
    """
    as_row = lambda b: b.reshape(1, -1).astype(jnp.float32)
    return (w1.astype(jnp.bfloat16), as_row(b1),
            w2.astype(jnp.bfloat16), as_row(b2),
            w3.astype(jnp.bfloat16), as_row(b3))


def neural_net_forward(x, params, *, out_dtype=jnp.float32, tile_b=None):
    """Pallas forward pass.  x: (B, input_size); params from prepare_params."""
    w1, b1, w2, b2, w3, b3 = params
    B, I = x.shape
    H = w1.shape[1]
    C = w3.shape[1]
    x_item = jnp.dtype(x.dtype).itemsize
    out_item = jnp.dtype(out_dtype).itemsize

    tb = _choose_tile_b(B, I, H, C, x_item, out_item) if tile_b is None else tile_b
    n_steps = pl.cdiv(B, tb)
    Bp = n_steps * tb
    # Batch-rows-only padding, and only when needed; no lane / K-dim padding.
    x_p = x if Bp == B else jnp.pad(x, ((0, Bp - B), (0, 0)))

    # All-weights-VMEM-resident scheme; verify it fits the budget.
    # TODO(synk): for hidden sizes where resident bf16 weights stop fitting
    # (H ~ 2-3k on v7x's 64 MiB), add a K/N-tiled grid axis with an f32
    # accumulator scratch (P3) instead of full residency.
    needed = _vmem_working_set(tb, I, H, C, x_item, out_item)
    assert needed <= _VMEM_BUDGET_BYTES, (
        f"VMEM working set {needed} B exceeds budget; switch to a tiled variant.")
    vmem_limit = min(56 * 1024 * 1024,
                     max(32 * 1024 * 1024, needed + 8 * 1024 * 1024))

    # Constant-index weight/bias blocks: fetched once, kept resident across the
    # batch grid, single-buffered (double-buffering them only wastes VMEM).
    def resident(a):
        return pl.BlockSpec(a.shape, lambda i: (0, 0),
                            pipeline_mode=pl.Buffered(1))

    in_specs = [
        pl.BlockSpec((tb, I), lambda i: (i, 0)),      # x streams over the batch grid
        resident(w1), resident(b1),
        resident(w2), resident(b2),
        resident(w3), resident(b3),
    ]
    out_specs = pl.BlockSpec((tb, C), lambda i: (i, 0))

    # Honest cost estimate of what actually executes (padded batch only).
    flops = 2 * Bp * (I * H + H * H + H * C)
    bytes_accessed = (Bp * I * x_item
                      + (w1.size + w2.size + w3.size) * w1.dtype.itemsize
                      + (b1.size + b2.size + b3.size) * 4
                      + Bp * C * out_item)

    out = pl.pallas_call(
        mlp_kernel,
        out_shape=jax.ShapeDtypeStruct((Bp, C), out_dtype),
        grid=(n_steps,),
        in_specs=in_specs,
        out_specs=out_specs,
        compiler_params=pltpu.CompilerParams(
            dimension_semantics=("parallel",),        # batch steps shard across TCs
            vmem_limit_bytes=vmem_limit),
        cost_estimate=pl.CostEstimate(flops=flops, transcendentals=0,
                                      bytes_accessed=bytes_accessed),
    )(x_p, w1, b1, w2, b2, w3, b3)

    return out if Bp == B else out[:B]


def init_params(key, input_size, hidden_size, num_classes):
    """Deterministic init mimicking nn.Linear's uniform(-1/sqrt(fan_in), ...)."""
    ks = jax.random.split(key, 6)

    def linear(kw, kb, fan_in, fan_out):
        bound = 1.0 / jnp.sqrt(fan_in)
        # Stored (in, out) so the kernel computes x @ W.
        w = jax.random.uniform(kw, (fan_in, fan_out), jnp.float32, -bound, bound)
        b = jax.random.uniform(kb, (1, fan_out), jnp.float32, -bound, bound)
        return w, b

    w1, b1 = linear(ks[0], ks[1], input_size, hidden_size)
    w2, b2 = linear(ks[2], ks[3], hidden_size, hidden_size)
    w3, b3 = linear(ks[4], ks[5], hidden_size, num_classes)
    return w1, b1, w2, b2, w3, b3


if __name__ == "__main__":
    input_size, hidden_size, num_classes = 16, 32, 10
    batch = 8

    key = jax.random.PRNGKey(0)
    k_x, k_p = jax.random.split(key)
    x = jax.random.normal(k_x, (batch, input_size), jnp.float32)

    raw = init_params(k_p, input_size, hidden_size, num_classes)
    params = prepare_params(*raw)          # one-time weight prep, not per call

    out = jax.block_until_ready(neural_net_forward(x, params))

    # Pure-JAX reference with the same bf16-operand / f32-accumulate numerics
    # that the kernel uses on the MXU.
    w1, b1, w2, b2, w3, b3 = raw
    lin = lambda h, w, b: jnp.dot(h.astype(jnp.bfloat16), w.astype(jnp.bfloat16),
                                  preferred_element_type=jnp.float32) + b
    ref = jnp.maximum(lin(x, w1, b1), 0.0)
    ref = jnp.maximum(lin(ref, w2, b2), 0.0)
    ref = lin(ref, w3, b3)

    assert out.shape == (batch, num_classes)
    assert jnp.allclose(out, ref, atol=1e-4, rtol=1e-4), float(
        jnp.max(jnp.abs(out - ref)))

    print("KERNEL_OK")
</pallas_src>

<mosaic_0001>
module attributes {stable_mosaic.version = 11 : i64} {
  func.func @mlp_kernel(%arg0: i32, %arg1: memref<8x16xf32, #tpu.memory_space<vmem>>, %arg2: memref<16x32xbf16, #tpu.memory_space<vmem>>, %arg3: memref<1x32xf32, #tpu.memory_space<vmem>>, %arg4: memref<32x32xbf16, #tpu.memory_space<vmem>>, %arg5: memref<1x32xf32, #tpu.memory_space<vmem>>, %arg6: memref<32x10xbf16, #tpu.memory_space<vmem>>, %arg7: memref<1x10xf32, #tpu.memory_space<vmem>>, %arg8: memref<8x10xf32, #tpu.memory_space<vmem>>) attributes {dimension_semantics = [#tpu.dimension_semantics<parallel>], iteration_bounds = array<i64: 1>, scalar_prefetch = 0 : i64, scratch_operands = 0 : i64, tpu.core_type = #tpu.core_type<tc>, window_params = [{transform_indices = @transform_0, window_bounds = array<i64: 8, 16>}, {pipeline_mode = #tpu.pipeline_mode<synchronous>, transform_indices = @transform_1, window_bounds = array<i64: 16, 32>}, {pipeline_mode = #tpu.pipeline_mode<synchronous>, transform_indices = @transform_2, window_bounds = array<i64: 1, 32>}, {pipeline_mode = #tpu.pipeline_mode<synchronous>, transform_indices = @transform_3, window_bounds = array<i64: 32, 32>}, {pipeline_mode = #tpu.pipeline_mode<synchronous>, transform_indices = @transform_4, window_bounds = array<i64: 1, 32>}, {pipeline_mode = #tpu.pipeline_mode<synchronous>, transform_indices = @transform_5, window_bounds = array<i64: 32, 10>}, {pipeline_mode = #tpu.pipeline_mode<synchronous>, transform_indices = @transform_6, window_bounds = array<i64: 1, 10>}, {transform_indices = @transform_7, window_bounds = array<i64: 8, 10>}]} {
    %c0 = arith.constant 0 : index
    %c0_0 = arith.constant 0 : index
    %0 = vector.load %arg1[%c0, %c0_0] : memref<8x16xf32, #tpu.memory_space<vmem>>, vector<8x16xf32>
    %1 = arith.truncf %0 : vector<8x16xf32> to vector<8x16xbf16>
    %c0_1 = arith.constant 0 : index
    %c0_2 = arith.constant 0 : index
    %2 = vector.load %arg2[%c0_1, %c0_2] : memref<16x32xbf16, #tpu.memory_space<vmem>>, vector<16x32xbf16>
    %cst = arith.constant dense<0.000000e+00> : vector<8x32xf32>
    %3 = tpu.matmul %1, %2, %cst {dimension_numbers = #tpu.dot_dimension_numbers<[1], [0], [0], [1], [0, 0, 1, 1], [], []>} : vector<8x16xbf16>, vector<16x32xbf16>, vector<8x32xf32> -> vector<8x32xf32>
    %c0_3 = arith.constant 0 : index
    %c0_4 = arith.constant 0 : index
    %4 = vector.load %arg3[%c0_3, %c0_4] : memref<1x32xf32, #tpu.memory_space<vmem>>, vector<1x32xf32>
    %5 = vector.broadcast %4 : vector<1x32xf32> to vector<8x32xf32>
    %6 = arith.addf %3, %5 : vector<8x32xf32>
    %cst_5 = arith.constant 0.000000e+00 : f32
    %7 = vector.broadcast %cst_5 : f32 to vector<8x32xf32>
    %8 = arith.maximumf %6, %7 : vector<8x32xf32>
    %9 = arith.truncf %8 : vector<8x32xf32> to vector<8x32xbf16>
    %c0_6 = arith.constant 0 : index
    %c0_7 = arith.constant 0 : index
    %10 = vector.load %arg4[%c0_6, %c0_7] : memref<32x32xbf16, #tpu.memory_space<vmem>>, vector<32x32xbf16>
    %cst_8 = arith.constant dense<0.000000e+00> : vector<8x32xf32>
    %11 = tpu.matmul %9, %10, %cst_8 {dimension_numbers = #tpu.dot_dimension_numbers<[1], [0], [0], [1], [0, 0, 1, 1], [], []>} : vector<8x32xbf16>, vector<32x32xbf16>, vector<8x32xf32> -> vector<8x32xf32>
    %c0_9 = arith.constant 0 : index
    %c0_10 = arith.constant 0 : index
    %12 = vector.load %arg5[%c0_9, %c0_10] : memref<1x32xf32, #tpu.memory_space<vmem>>, vector<1x32xf32>
    %13 = vector.broadcast %12 : vector<1x32xf32> to vector<8x32xf32>
    %14 = arith.addf %11, %13 : vector<8x32xf32>
    %cst_11 = arith.constant 0.000000e+00 : f32
    %15 = vector.broadcast %cst_11 : f32 to vector<8x32xf32>
    %16 = arith.maximumf %14, %15 : vector<8x32xf32>
    %17 = arith.truncf %16 : vector<8x32xf32> to vector<8x32xbf16>
    %c0_12 = arith.constant 0 : index
    %c0_13 = arith.constant 0 : index
    %18 = vector.load %arg6[%c0_12, %c0_13] : memref<32x10xbf16, #tpu.memory_space<vmem>>, vector<32x10xbf16>
    %cst_14 = arith.constant dense<0.000000e+00> : vector<8x10xf32>
    %19 = tpu.matmul %17, %18, %cst_14 {dimension_numbers = #tpu.dot_dimension_numbers<[1], [0], [0], [1], [0, 0, 1, 1], [], []>} : vector<8x32xbf16>, vector<32x10xbf16>, vector<8x10xf32> -> vector<8x10xf32>
    %c0_15 = arith.constant 0 : index
    %c0_16 = arith.constant 0 : index
    %20 = vector.load %arg7[%c0_15, %c0_16] : memref<1x10xf32, #tpu.memory_space<vmem>>, vector<1x10xf32>
    %21 = vector.broadcast %20 : vector<1x10xf32> to vector<8x10xf32>
    %22 = arith.addf %19, %21 : vector<8x10xf32>
    %c0_17 = arith.constant 0 : index
    %c0_18 = arith.constant 0 : index
    %23 = vector.load %arg8[%c0_17, %c0_18] : memref<8x10xf32, #tpu.memory_space<vmem>>, vector<8x10xf32>
    tpu.vector_store %arg8[%c0_17, %c0_18], %22 {strides = array<i32>} : memref<8x10xf32, #tpu.memory_space<vmem>>, vector<8x10xf32>,
    return
  }
  func.func @transform_0(%arg0: i32) -> (i32, i32) {
    %c0_i32 = arith.constant 0 : i32
    %c0_i32_0 = arith.constant 0 : i32
    return %arg0, %c0_i32 : i32, i32
  }
  func.func @transform_1(%arg0: i32) -> (i32, i32) {
    %c0_i32 = arith.constant 0 : i32
    %c0_i32_0 = arith.constant 0 : i32
    %c0_i32_1 = arith.constant 0 : i32
    return %c0_i32, %c0_i32_0 : i32, i32
  }
  func.func @transform_2(%arg0: i32) -> (i32, i32) {
    %c0_i32 = arith.constant 0 : i32
    %c0_i32_0 = arith.constant 0 : i32
    %c0_i32_1 = arith.constant 0 : i32
    return %c0_i32, %c0_i32_0 : i32, i32
  }
  func.func @transform_3(%arg0: i32) -> (i32, i32) {
    %c0_i32 = arith.constant 0 : i32
    %c0_i32_0 = arith.constant 0 : i32
    %c0_i32_1 = arith.constant 0 : i32
    return %c0_i32, %c0_i32_0 : i32, i32
  }
  func.func @transform_4(%arg0: i32) -> (i32, i32) {
    %c0_i32 = arith.constant 0 : i32
    %c0_i32_0 = arith.constant 0 : i32
    %c0_i32_1 = arith.constant 0 : i32
    return %c0_i32, %c0_i32_0 : i32, i32
  }
  func.func @transform_5(%arg0: i32) -> (i32, i32) {
    %c0_i32 = arith.constant 0 : i32
    %c0_i32_0 = arith.constant 0 : i32
    %c0_i32_1 = arith.constant 0 : i32
    return %c0_i32, %c0_i32_0 : i32, i32
  }
  func.func @transform_6(%arg0: i32) -> (i32, i32) {
    %c0_i32 = arith.constant 0 : i32
    %c0_i32_0 = arith.constant 0 : i32
    %c0_i32_1 = arith.constant 0 : i32
    return %c0_i32, %c0_i32_0 : i32, i32
  }
  func.func @transform_7(%arg0: i32) -> (i32, i32) {
    %c0_i32 = arith.constant 0 : i32
    %c0_i32_0 = arith.constant 0 : i32
    return %arg0, %c0_i32 : i32, i32
  }
}

</mosaic_0001>

<bundles_post_ra>
// kernel: tpu_custom_call.1
= control target key start
LH: loop header
LB: loop body
LE: loop exit
PB: predicated region body
PF: predicated region fallthrough
CT: control target
= control target key end

     0   :  { %12 = vsyncpa [#allocation3], 0  ;;  %s451_s0 = inlined_call_operand.vmem [shape: f32[8,16], index: 0, kind: input, shape index: {}]   ;;  %s452_s1 = inlined_call_operand.hbm [shape: bf16[16,32], index: 1, kind: input, shape index: {}]   ;;  %s453_s2 = inlined_call_operand.vmem [shape: f32[1,32], index: 2, kind: input, shape index: {}]   ;;  %s454_s3 = inlined_call_operand.vmem [shape: bf16[32,32], index: 3, kind: input, shape index: {}]   ;;  %s455_s4 = inlined_call_operand.vmem [shape: f32[1,32], index: 4, kind: input, shape index: {}]   ;;  %s456_s5 = inlined_call_operand.vmem [shape: bf16[32,10], index: 5, kind: input, shape index: {}]   ;;  %s457_s6 = inlined_call_operand.vmem [shape: f32[1,10], index: 6, kind: input, shape index: {}]   ;;  %s458_s7 = inlined_call_operand.hbm [shape: f32[8,10], index: 7, kind: output, shape index: {}]  }
   0x1   :  { %13 = vsyncpa [#allocation4], 0  ;;  %s357_s24 = smov [#allocation2]   ;;  %s309_s28 = scalar_lea.hbm %s452_s1, 128 }
   0x2   :  { %s21_s25 = sshll.u32 %s357_s24, 4  ;;  %p310_p0 = scmp.ne.s32.totalorder %s452_s1, %s309_s28  ;;  %s22_s25 = int_to_ptr.vmem [resolvable:$true] %s21_s25 }
   0x3   :  { %p313_p1 = scmp.lt.u32.totalorder %s309_s28, %s452_s1 }
   0x5   :  { %p315_p2 = pnand %p313_p1, %p310_p0 }
   0x7   :  { %318 = shalt.err (!%p315_p2)
}
   0x8   :  { %s319_s10 = scalar_lea.vmem %s22_s25, 128  ;;  %p324_p4 = scmp.lt.s32.totalorder %s22_s25, %s22_s25 }
   0x9   :  { %p320_p3 = scmp.ne.s32.totalorder %s22_s25, %s319_s10  ;;  %p325_p5 = scmp.lt.s32.totalorder %s319_s10, %s319_s10 }
   0xb   :  { %p326_p6 = por %p325_p5, %p324_p4 }
   0xd   :  { %p327_p7 = pnand %p326_p6, %p320_p3 }
   0xf   :  { %330 = shalt.err (!%p327_p7)
}
  0x10   :  { %s358_s11 = smov 64   ;;  %s359_s12 = smov 4  }
  0x11   :  { %27 = dma.hbm_to_vmem [thread:$0]  %s452_s1, 128, %s22_s25, [#allocation3], %s358_s11, %s358_s11, %s359_s12  }
  0x12   :  { %353 = dma.done.wait [#allocation3], 128  }
  0x13   :  { %354 = vsyncadd [#allocation3], 4294967168  ;;  %v360_v0 = vmov 0.0   ;;  %vm361_vm0 = vmmov 0   ;;  %v304_v1 = vld [vmem:[#allocation2] sm:$0xff]   ;;  %vm59_vm1 = vcmask 130048  }
  0x14   :  { %276 = vmatprep.subr.bf16.mxu0 %v360_v0  ;;  %278 = vmatprep.mubr.msk.bf16.mxu0 %vm361_vm0, %v360_v0  ;;  %v42_v2 = vld [vmem:[%s451_s0] sm:$0xff]  ;;  %v306_v5 = vld [vmem:[%s454_s3 + $0x8] sm:$0xff]   ;;  %vm128_vm2 = vcmask 261120   ;;  %s362_s27 = smov [#allocation5]   ;;  %vm240_vm3 = vcmask 80896  }
  0x15   :  { %282 = vmatprep.subr.bf16.mxu1 %v360_v0  ;;  %286 = vmatprep.mubr.msk.bf16.mxu1 %vm361_vm0, %v360_v0  ;;  %v43_v3 = vpack.c.bf16 %v42_v2, %v42_v2  ;;  %v305_v4 = vld [vmem:[%s454_s3] sm:$0xff]   ;;  %v308_v15 = vld [vmem:[%s456_s5 + $0x8] sm:$0xff]   ;;  %s248_s28 = sshll.u32 %s362_s27, 4  ;;  %s249_s28 = int_to_ptr.vmem [resolvable:$true] %s248_s28 }
  0x16   :  { %277 = vmatpush3.bf16.msra.mxu0 %v304_v1  ;;  %283 = vmatpush3.bf16.msra.mxu1 %v305_v4  ;;  %v307_v6 = vld [vmem:[%s456_s5] sm:$0xff]   ;;  %p336_p9 = scmp.lt.s32.totalorder %s249_s28, %s249_s28 }
  0x17   :  { %290 = vmatprep.subr.bf16.mxu0 %v360_v0  ;;  %284 = vmatprep.subr.bf16.mxu1 %v360_v0  ;;  %v257_v7 = vld [vmem:[%s453_s2] ss:$0 sm:$0xff] }
  0x18   :  { %v260_v16 = vld [vmem:[%s455_s4] ss:$0 sm:$0xff]  ;;  %s331_s4 = scalar_lea.vmem %s249_s28, 128 }
  0x19   :  { %279 = vmatmul.mubr.msk.bf16.vlgmr.msra.gmra.mrb[0].mxu0 %vm59_vm1, %v43_v3  ;;  %v264_v24 = vld [vmem:[%s457_s6] ss:$0 sm:$0xff]  ;;  %p332_p8 = scmp.ne.s32.totalorder %s249_s28, %s331_s4  ;;  %p337_p10 = scmp.lt.s32.totalorder %s331_s4, %s331_s4 }
  0x1a   :  { %294 = vmatprep.mubr.msk.bf16.mxu0 %vm361_vm0, %v360_v0  ;;  %285 = vmatpush3.bf16.msra.mxu1 %v306_v5 }
  0x1b   :  { %291 = vmatpush3.bf16.msra.mxu0 %v307_v6  ;;  %p338_p11 = por %p337_p10, %p336_p9 }
  0x1c   :  { %292 = vmatprep.subr.bf16.mxu0 %v360_v0 }
  0x1d   :  { %p339_p12 = pnand %p338_p11, %p332_p8 }
  0x1f   :  { %293 = vmatpush3.bf16.msra.mxu0 %v308_v15 }
  0xec   :  { %v97_v8 = vpop.f32.mrb[0].mxu0 }
  0xed   :  { %v98_v9 = vadd.f32 %v257_v7, %v97_v8  ;;  %v280_v10 = vpop.f32.mrb[1].mxu0 }
  0xee   :  { %v100_v11 = vpop.f32.mrb[2].mxu0 }
  0xef   :  { %v103_v12 = vmax.f32 %v98_v9, 0.0  ;;  %v281_v13 = vpop.f32.mrb[3].mxu0 }
  0xf1   :  { %v104_v14 = vpack.c.bf16 %v103_v12, %v103_v12 }
  0xf3   :  { %287 = vmatmul.mubr.msk.bf16.vlgmr.msra.gmra.mrb[0].mxu1 %vm128_vm2, %v104_v14 }
 0x1c6   :  { %v166_v17 = vpop.f32.mrb[0].mxu1 }
 0x1c7   :  { %v167_v18 = vadd.f32 %v260_v16, %v166_v17  ;;  %v288_v19 = vpop.f32.mrb[1].mxu1 }
 0x1c8   :  { %v169_v20 = vpop.f32.mrb[2].mxu1 }
 0x1c9   :  { %v172_v21 = vmax.f32 %v167_v18, 0.0  ;;  %v289_v22 = vpop.f32.mrb[3].mxu1 }
 0x1cb   :  { %v173_v23 = vpack.c.bf16 %v172_v21, %v172_v21 }
 0x1cd   :  { %295 = vmatmul.mubr.msk.bf16.vlgmr.msra.gmra.mrb[4].mxu0 %vm128_vm2, %v173_v23 }
 0x2a0   :  { %v234_v25 = vpop.f32.mrb[4].mxu0 }
 0x2a1   :  { %v235_v26 = vadd.f32 %v264_v24, %v234_v25  ;;  %v296_v27 = vpop.f32.mrb[5].mxu0 }
 0x2a2   :  { %v237_v28 = vpop.f32.mrb[6].mxu0 }
 0x2a3   :  { %v297_v29 = vpop.f32.mrb[7].mxu0  ;;  %241 = vst.msk [vmem:[#allocation5] sm:$0xff] %vm240_vm3, %v235_v26 }
 0x2a4   :  { %342 = shalt.err (!%p339_p12)
}
 0x2a5   :  { %s343_s6 = scalar_lea.hbm %s458_s7, 128 }
 0x2a6   :  { %p344_p13 = scmp.ne.s32.totalorder %s458_s7, %s343_s6  ;;  %p347_p0 = scmp.lt.u32.totalorder %s343_s6, %s458_s7 }
 0x2a8   :  { %p349_p1 = pnand %p347_p0, %p344_p13 }
 0x2aa   :  { %352 = shalt.err (!%p349_p1)
}
 0x2ab   :  { %251 = dma.vmem_to_hbm [thread:$0]  %s249_s28, 128, %s458_s7, [#allocation4]  }
 0x2ac   :  { %355 = dma.done.wait [#allocation4], 128  }
 0x2ad   :  { %356 = vsyncadd [#allocation4], 4294967168 }
 0x2ae   :  { %255 = vsyncpa [#allocation3], 1 }
 0x2af   :  { %256 = vsyncpa [#allocation4], 1 }

</bundles_post_ra>
